<compile_context>
chip_gen: v6e
topology: v6e:2x2x1
jax: 0.10.0
libtpu: 0.0.40
codegen_flags: <defaults>
</compile_context>

<pallas_src>
import functools

import jax
import jax.numpy as jnp
from jax.experimental import pallas as pl
from jax.experimental.pallas import tpu as pltpu

EPS = 1e-5


def _round_up(x, m):
    return ((x + m - 1) // m) * m


# ----------------------------- Pallas kernel --------------------------------
def _make_basic_block_kernel(stride, projection, tl, l_out, p0):
    """Builds the fused kernel for a static (stride, projection, tile) config."""
    te = tl + 2  # conv1 rows computed per tile: 1-row halo each side for conv2

    def kernel(*refs):
        if stride == 1:
            x_refs = refs[:1]
            rest = refs[1:]
        else:
            x_refs = refs[:2]
            rest = refs[2:]
        if projection:
            w1_ref, w2_ref, wsc_ref, bias_ref, o_ref = rest
        else:
            w1_ref, w2_ref, bias_ref, o_ref = rest

        t = pl.program_id(1)
        row0 = pl.multiple_of(t * tl, 8)  # first output row of this tile

        bias = bias_ref[...].astype(jnp.float32)          # (2, Cout)
        b1 = bias[0:1, :]                                 # bn1 bias
        b2sc = bias[1:2, :]                               # bn2 bias (+ bnsc bias)

        # ---- conv1 (k=3; BN1 scale folded into w1) --------------------------
        # h_ext row i corresponds to conv1 output row m = row0 - 1 + i.
        # Tap k of row m reads x[stride*m + k - 1].
        if stride == 1:
            (x_ref,) = x_refs                              # xP[j] = x[j - p0]
            base = row0 + p0 - 2
            xs = [x_ref[pl.ds(base + k, te), :] for k in range(3)]
        else:
            xe_ref, xo_ref = x_refs                        # xe[j]=x[2(j-p0)], xo[j]=x[2(j-p0)+1]
            xs = [
                xo_ref[pl.ds(row0 + p0 - 2, te), :],       # x[2m - 1]
                xe_ref[pl.ds(row0 + p0 - 1, te), :],       # x[2m]
                xo_ref[pl.ds(row0 + p0 - 1, te), :],       # x[2m + 1]
            ]

        h = jnp.dot(xs[0], w1_ref[0], preferred_element_type=jnp.float32)
        h = h + jnp.dot(xs[1], w1_ref[1], preferred_element_type=jnp.float32)
        h = h + jnp.dot(xs[2], w1_ref[2], preferred_element_type=jnp.float32)
        h = jnp.maximum(h + b1, 0.0)                       # bn1 bias + relu

        # halo rows outside [0, l_out) are conv2's zero padding -> force zero
        m = row0 - 1 + jax.lax.broadcasted_iota(jnp.int32, (te, 1), 0)
        h = jnp.where((m >= 0) & (m < l_out), h, 0.0)
        hq = h.astype(w2_ref.dtype)

        # ---- conv2 (k=3, stride=1; BN2 scale folded into w2) ----------------
        out = jnp.dot(hq[0:tl, :], w2_ref[0], preferred_element_type=jnp.float32)
        out = out + jnp.dot(hq[1:tl + 1, :], w2_ref[1], preferred_element_type=jnp.float32)
        out = out + jnp.dot(hq[2:tl + 2, :], w2_ref[2], preferred_element_type=jnp.float32)
        out = out + b2sc

        # ---- shortcut --------------------------------------------------------
        # Center-tap rows xs[1][1:tl+1] are exactly x[stride*l] for this tile.
        res_rows = xs[1][1:tl + 1, :]
        if projection:
            sc = jnp.dot(res_rows, wsc_ref[...], preferred_element_type=jnp.float32)
        else:
            sc = res_rows.astype(jnp.float32)

        o_ref[...] = jnp.maximum(out + sc, 0.0).astype(o_ref.dtype)

    return kernel


# ------------------------------- wrapper -------------------------------------
def _fold_bn(p):
    scale = p["gamma"] / jnp.sqrt(p["var"] + EPS)
    bias = p["beta"] - p["mean"] * scale
    return scale.astype(jnp.float32), bias.astype(jnp.float32)


@functools.partial(jax.jit, static_argnames=("stride", "matmul_dtype", "tile_l"))
def basic_block_forward(x_ncl, params, stride, *, matmul_dtype=jnp.bfloat16, tile_l=256):
    """x_ncl: (N, Cin, L) PyTorch layout. Returns (N, Cout, Lout)."""
    N, c_in, L = x_ncl.shape
    c_out = params["w1"].shape[0]
    if stride not in (1, 2):
        raise NotImplementedError("only stride 1 and 2 (ResNet18) are supported")
    l_out = (L - 1) // stride + 1
    projection = (stride != 1) or (c_in != c_out)

    p0 = 8                                               # front zero-pad rows
    tl = _round_up(min(tile_l, _round_up(l_out, 8)), 8)  # Lout tile (mult of 8)
    lp = _round_up(l_out, tl)                            # padded Lout
    n_t = lp // tl
    lx = lp + p0 + 8                                     # padded activation rows

    # activations: NCW -> NLC once at the block boundary
    x_nlc = jnp.transpose(x_ncl, (0, 2, 1)).astype(matmul_dtype)   # (N, L, Cin)

    if stride == 1:
        xP = jnp.pad(x_nlc, ((0, 0), (p0, lx - p0 - L), (0, 0)))
        x_inputs = [xP]
        x_specs = [pl.BlockSpec((None, lx, c_in), lambda n, t: (n, 0, 0))]
    else:  # stride == 2: even/odd phase split -> each x row read exactly once
        xe = x_nlc[:, 0::2, :]
        xo = x_nlc[:, 1::2, :]
        xeP = jnp.pad(xe, ((0, 0), (p0, lx - p0 - xe.shape[1]), (0, 0)))
        xoP = jnp.pad(xo, ((0, 0), (p0, lx - p0 - xo.shape[1]), (0, 0)))
        x_inputs = [xeP, xoP]
        x_specs = [pl.BlockSpec((None, lx, c_in), lambda n, t: (n, 0, 0)),
                   pl.BlockSpec((None, lx, c_in), lambda n, t: (n, 0, 0))]

    # weights: fold BN scales in once, reshape for NLC matmuls, cast to matmul dtype
    bn1s, bn1b = _fold_bn(params["bn1"])
    bn2s, bn2b = _fold_bn(params["bn2"])
    w1 = (jnp.transpose(params["w1"], (2, 1, 0)) * bn1s[None, None, :]).astype(matmul_dtype)
    w2 = (jnp.transpose(params["w2"], (2, 1, 0)) * bn2s[None, None, :]).astype(matmul_dtype)

    weight_inputs = [w1, w2]
    weight_specs = [pl.BlockSpec((3, c_in, c_out), lambda n, t: (0, 0, 0)),
                    pl.BlockSpec((3, c_out, c_out), lambda n, t: (0, 0, 0))]
    if projection:
        scs, scb = _fold_bn(params["bnsc"])
        wsc = (jnp.transpose(params["wsc"][:, :, 0], (1, 0)) * scs[None, :]).astype(matmul_dtype)
        weight_inputs.append(wsc)
        weight_specs.append(pl.BlockSpec((c_in, c_out), lambda n, t: (0, 0)))
    else:
        scb = jnp.zeros((c_out,), jnp.float32)

    # bn2 bias and shortcut-BN bias both add to the pre-ReLU sum -> pre-sum them.
    bias_pack = jnp.stack([bn1b, bn2b + scb], axis=0).astype(jnp.float32)   # (2, Cout)
    weight_inputs.append(bias_pack)
    weight_specs.append(pl.BlockSpec((2, c_out), lambda n, t: (0, 0)))

    kernel = _make_basic_block_kernel(stride, projection, tl, l_out, p0)

    # explicit VMEM budget (double-buffered blocks + intermediate headroom),
    # capped well under v7x's 64 MiB physical VMEM.
    isz = jnp.dtype(matmul_dtype).itemsize
    block_bytes = (len(x_inputs) * lx * c_in * isz
                   + (3 * c_in * c_out + 3 * c_out * c_out
                      + (c_in * c_out if projection else 0)) * isz
                   + 2 * c_out * 4
                   + tl * c_out * 4)
    scratch_bytes = 8 * (tl + 8) * max(c_in, c_out) * 4
    vmem_limit = int(min(48 * 2**20, max(16 * 2**20, 2 * (2 * block_bytes + scratch_bytes))))

    out = pl.pallas_call(
        kernel,
        out_shape=jax.ShapeDtypeStruct((N, lp, c_out), jnp.float32),
        grid_spec=pltpu.PrefetchScalarGridSpec(
            num_scalar_prefetch=0,
            grid=(N, n_t),
            in_specs=x_specs + weight_specs,
            out_specs=pl.BlockSpec((None, tl, c_out), lambda n, t: (n, t, 0)),
        ),
        compiler_params=pltpu.CompilerParams(
            dimension_semantics=("parallel", "parallel"),
            vmem_limit_bytes=vmem_limit,
        ),
    )(*x_inputs, *weight_inputs)

    return jnp.transpose(out[:, :l_out, :], (0, 2, 1))              # (N, Cout, Lout)


# --------------------------- pure-JAX reference -------------------------------
def ref_forward(x, params, stride):
    def conv1d(x, w, s, pad):
        return jax.lax.conv_general_dilated(
            x, w, window_strides=(s,), padding=[(pad, pad)],
            dimension_numbers=("NCH", "OIH", "NCH"))

    def bn(x, p):
        scale = p["gamma"] / jnp.sqrt(p["var"] + EPS)
        bias = p["beta"] - p["mean"] * scale
        return x * scale[None, :, None] + bias[None, :, None]

    c_in = x.shape[1]
    c_out = params["w1"].shape[0]
    h = jax.nn.relu(bn(conv1d(x, params["w1"], stride, 1), params["bn1"]))
    out = bn(conv1d(h, params["w2"], 1, 1), params["bn2"])
    if stride != 1 or c_in != c_out:
        sc = bn(conv1d(x, params["wsc"], stride, 0), params["bnsc"])
    else:
        sc = x
    return jax.nn.relu(out + sc)


# ------------------------------ param init ------------------------------------
def init_params(key, c_in, c_out, stride):
    ks = jax.random.split(key, 6)

    def bn_params(k):
        k1, k2, k3, k4 = jax.random.split(k, 4)
        return {
            "gamma": jax.random.uniform(k1, (c_out,), jnp.float32, 0.5, 1.5),
            "beta": 0.1 * jax.random.normal(k2, (c_out,), jnp.float32),
            "mean": 0.1 * jax.random.normal(k3, (c_out,), jnp.float32),
            "var": jax.random.uniform(k4, (c_out,), jnp.float32, 0.5, 1.5),
        }

    params = {
        "w1": 0.2 * jax.random.normal(ks[0], (c_out, c_in, 3), jnp.float32),
        "w2": 0.2 * jax.random.normal(ks[1], (c_out, c_out, 3), jnp.float32),
        "bn1": bn_params(ks[2]),
        "bn2": bn_params(ks[3]),
    }
    if stride != 1 or c_in != c_out:
        params["wsc"] = 0.2 * jax.random.normal(ks[4], (c_out, c_in, 1), jnp.float32)
        params["bnsc"] = bn_params(ks[5])
    return params


# ---------------------------------- main ---------------------------------------
if __name__ == "__main__":
    key = jax.random.PRNGKey(0)
    N = 2
    #          name                 Cin Cout  L  stride  tile_l
    cases = [("identity_s1",         8,   8, 16,   1,     256),
             ("projection_s1",       4,   8, 16,   1,     256),
             ("projection_s2",       4,   8, 16,   2,     256),
             ("identity_s1_tiled",   8,   8, 24,   1,       8),
             ("projection_s2_tiled", 4,   8, 23,   2,       8)]

    for i, (name, c_in, c_out, L, stride, tile_l) in enumerate(cases):
        kp, kx = jax.random.split(jax.random.fold_in(key, i))
        params = init_params(kp, c_in, c_out, stride)
        x = jax.random.normal(kx, (N, c_in, L), jnp.float32)
        ref = ref_forward(x, params, stride)

        # exact (f32 matmul) path: tight tolerance
        out_f32 = jax.block_until_ready(
            basic_block_forward(x, params, stride, matmul_dtype=jnp.float32, tile_l=tile_l))
        assert out_f32.shape == ref.shape, name
        assert jnp.allclose(out_f32, ref, atol=1e-4, rtol=1e-4), f"f32 mismatch: {name}"

        # perf (bf16 matmul operands, f32 accumulation) path: bf16-level tolerance
        out_bf16 = jax.block_until_ready(
            basic_block_forward(x, params, stride, matmul_dtype=jnp.bfloat16, tile_l=tile_l))
        assert out_bf16.shape == ref.shape, name
        assert jnp.allclose(out_bf16, ref, atol=5e-2, rtol=5e-2), f"bf16 mismatch: {name}"

    print("KERNEL_OK")
</pallas_src>

<mosaic_0001>
module attributes {stable_mosaic.version = 11 : i64} {
  func.func @kernel(%arg0: i32, %arg1: i32, %arg2: memref<1x32x8xf32, #tpu.memory_space<vmem>>, %arg3: memref<3x8x8xf32, #tpu.memory_space<vmem>>, %arg4: memref<3x8x8xf32, #tpu.memory_space<vmem>>, %arg5: memref<2x8xf32, #tpu.memory_space<vmem>>, %arg6: memref<1x16x8xf32, #tpu.memory_space<vmem>>) attributes {dimension_semantics = [#tpu.dimension_semantics<parallel>, #tpu.dimension_semantics<parallel>], iteration_bounds = array<i64: 2, 1>, scalar_prefetch = 0 : i64, scratch_operands = 0 : i64, tpu.core_type = #tpu.core_type<tc>, window_params = [{transform_indices = @transform_0, window_bounds = array<i64: 1, 32, 8>}, {pipeline_mode = #tpu.pipeline_mode<synchronous>, transform_indices = @transform_1, window_bounds = array<i64: 3, 8, 8>}, {pipeline_mode = #tpu.pipeline_mode<synchronous>, transform_indices = @transform_2, window_bounds = array<i64: 3, 8, 8>}, {pipeline_mode = #tpu.pipeline_mode<synchronous>, transform_indices = @transform_3, window_bounds = array<i64: 2, 8>}, {transform_indices = @transform_4, window_bounds = array<i64: 1, 16, 8>}]} {
    %c16_i32 = arith.constant 16 : i32
    %0 = arith.muli %arg1, %c16_i32 : i32
    %1 = tpu.assume_multiple %0, 8 : i32
    %c0 = arith.constant 0 : index
    %c0_0 = arith.constant 0 : index
    %2 = vector.load %arg5[%c0, %c0_0] : memref<2x8xf32, #tpu.memory_space<vmem>>, vector<2x8xf32>
    %3 = vector.extract_strided_slice %2 {offsets = [0, 0], sizes = [1, 8], strides = [1, 1]} : vector<2x8xf32> to vector<1x8xf32>
    %4 = vector.extract_strided_slice %2 {offsets = [1, 0], sizes = [1, 8], strides = [1, 1]} : vector<2x8xf32> to vector<1x8xf32>
    %c8_i32 = arith.constant 8 : i32
    %5 = arith.addi %1, %c8_i32 : i32
    %c2_i32 = arith.constant 2 : i32
    %6 = arith.subi %5, %c2_i32 : i32
    %c0_i32 = arith.constant 0 : i32
    %7 = arith.addi %6, %c0_i32 : i32
    %c0_1 = arith.constant 0 : index
    %8 = arith.index_cast %7 : i32 to index
    %c0_2 = arith.constant 0 : index
    %9 = vector.load %arg2[%c0_1, %8, %c0_2] : memref<1x32x8xf32, #tpu.memory_space<vmem>>, vector<1x18x8xf32>
    %10 = vector.shape_cast %9 : vector<1x18x8xf32> to vector<18x8xf32>
    %c1_i32 = arith.constant 1 : i32
    %11 = arith.addi %6, %c1_i32 : i32
    %c0_3 = arith.constant 0 : index
    %12 = arith.index_cast %11 : i32 to index
    %c0_4 = arith.constant 0 : index
    %13 = vector.load %arg2[%c0_3, %12, %c0_4] : memref<1x32x8xf32, #tpu.memory_space<vmem>>, vector<1x18x8xf32>
    %14 = vector.shape_cast %13 : vector<1x18x8xf32> to vector<18x8xf32>
    %c2_i32_5 = arith.constant 2 : i32
    %15 = arith.addi %6, %c2_i32_5 : i32
    %c0_6 = arith.constant 0 : index
    %16 = arith.index_cast %15 : i32 to index
    %c0_7 = arith.constant 0 : index
    %17 = vector.load %arg2[%c0_6, %16, %c0_7] : memref<1x32x8xf32, #tpu.memory_space<vmem>>, vector<1x18x8xf32>
    %18 = vector.shape_cast %17 : vector<1x18x8xf32> to vector<18x8xf32>
    %c0_8 = arith.constant 0 : index
    %c0_9 = arith.constant 0 : index
    %c0_10 = arith.constant 0 : index
    %19 = vector.load %arg3[%c0_8, %c0_9, %c0_10] : memref<3x8x8xf32, #tpu.memory_space<vmem>>, vector<1x8x8xf32>
    %20 = vector.shape_cast %19 : vector<1x8x8xf32> to vector<8x8xf32>
    %cst = arith.constant dense<0.000000e+00> : vector<18x8xf32>
    %21 = tpu.matmul %10, %20, %cst {dimension_numbers = #tpu.dot_dimension_numbers<[1], [0], [0], [1], [0, 0, 1, 1], [], []>} : vector<18x8xf32>, vector<8x8xf32>, vector<18x8xf32> -> vector<18x8xf32>
    %c1 = arith.constant 1 : index
    %c0_11 = arith.constant 0 : index
    %c0_12 = arith.constant 0 : index
    %22 = vector.load %arg3[%c1, %c0_11, %c0_12] : memref<3x8x8xf32, #tpu.memory_space<vmem>>, vector<1x8x8xf32>
    %23 = vector.shape_cast %22 : vector<1x8x8xf32> to vector<8x8xf32>
    %cst_13 = arith.constant dense<0.000000e+00> : vector<18x8xf32>
    %24 = tpu.matmul %14, %23, %cst_13 {dimension_numbers = #tpu.dot_dimension_numbers<[1], [0], [0], [1], [0, 0, 1, 1], [], []>} : vector<18x8xf32>, vector<8x8xf32>, vector<18x8xf32> -> vector<18x8xf32>
    %25 = arith.addf %21, %24 : vector<18x8xf32>
    %c2 = arith.constant 2 : index
    %c0_14 = arith.constant 0 : index
    %c0_15 = arith.constant 0 : index
    %26 = vector.load %arg3[%c2, %c0_14, %c0_15] : memref<3x8x8xf32, #tpu.memory_space<vmem>>, vector<1x8x8xf32>
    %27 = vector.shape_cast %26 : vector<1x8x8xf32> to vector<8x8xf32>
    %cst_16 = arith.constant dense<0.000000e+00> : vector<18x8xf32>
    %28 = tpu.matmul %18, %27, %cst_16 {dimension_numbers = #tpu.dot_dimension_numbers<[1], [0], [0], [1], [0, 0, 1, 1], [], []>} : vector<18x8xf32>, vector<8x8xf32>, vector<18x8xf32> -> vector<18x8xf32>
    %29 = arith.addf %25, %28 : vector<18x8xf32>
    %30 = vector.broadcast %3 : vector<1x8xf32> to vector<18x8xf32>
    %31 = arith.addf %29, %30 : vector<18x8xf32>
    %cst_17 = arith.constant 0.000000e+00 : f32
    %32 = vector.broadcast %cst_17 : f32 to vector<18x8xf32>
    %33 = arith.maximumf %31, %32 : vector<18x8xf32>
    %c1_i32_18 = arith.constant 1 : i32
    %34 = arith.subi %1, %c1_i32_18 : i32
    %35 = tpu.iota {dimensions = array<i32: 0>} : vector<18x1xi32>
    %36 = vector.broadcast %34 : i32 to vector<18x1xi32>
    %37 = arith.addi %36, %35 : vector<18x1xi32>
    %c0_i32_19 = arith.constant 0 : i32
    %38 = vector.broadcast %c0_i32_19 : i32 to vector<18x1xi32>
    %39 = arith.cmpi sge, %37, %38 : vector<18x1xi32>
    %c16_i32_20 = arith.constant 16 : i32
    %40 = vector.broadcast %c16_i32_20 : i32 to vector<18x1xi32>
    %41 = arith.cmpi slt, %37, %40 : vector<18x1xi32>
    %42 = arith.andi %39, %41 : vector<18x1xi1>
    %cst_21 = arith.constant 0.000000e+00 : f32
    %43 = vector.shape_cast %42 : vector<18x1xi1> to vector<18x1xi1>
    %44 = vector.broadcast %43 : vector<18x1xi1> to vector<18x8xi1>
    %45 = vector.broadcast %cst_21 : f32 to vector<18x8xf32>
    %46 = arith.select %44, %33, %45 : vector<18x8xi1>, vector<18x8xf32>
    %47 = vector.extract_strided_slice %46 {offsets = [0, 0], sizes = [16, 8], strides = [1, 1]} : vector<18x8xf32> to vector<16x8xf32>
    %c0_22 = arith.constant 0 : index
    %c0_23 = arith.constant 0 : index
    %c0_24 = arith.constant 0 : index
    %48 = vector.load %arg4[%c0_22, %c0_23, %c0_24] : memref<3x8x8xf32, #tpu.memory_space<vmem>>, vector<1x8x8xf32>
    %49 = vector.shape_cast %48 : vector<1x8x8xf32> to vector<8x8xf32>
    %cst_25 = arith.constant dense<0.000000e+00> : vector<16x8xf32>
    %50 = tpu.matmul %47, %49, %cst_25 {dimension_numbers = #tpu.dot_dimension_numbers<[1], [0], [0], [1], [0, 0, 1, 1], [], []>} : vector<16x8xf32>, vector<8x8xf32>, vector<16x8xf32> -> vector<16x8xf32>
    %51 = vector.extract_strided_slice %46 {offsets = [1, 0], sizes = [16, 8], strides = [1, 1]} : vector<18x8xf32> to vector<16x8xf32>
    %c1_26 = arith.constant 1 : index
    %c0_27 = arith.constant 0 : index
    %c0_28 = arith.constant 0 : index
    %52 = vector.load %arg4[%c1_26, %c0_27, %c0_28] : memref<3x8x8xf32, #tpu.memory_space<vmem>>, vector<1x8x8xf32>
    %53 = vector.shape_cast %52 : vector<1x8x8xf32> to vector<8x8xf32>
    %cst_29 = arith.constant dense<0.000000e+00> : vector<16x8xf32>
    %54 = tpu.matmul %51, %53, %cst_29 {dimension_numbers = #tpu.dot_dimension_numbers<[1], [0], [0], [1], [0, 0, 1, 1], [], []>} : vector<16x8xf32>, vector<8x8xf32>, vector<16x8xf32> -> vector<16x8xf32>
    %55 = arith.addf %50, %54 : vector<16x8xf32>
    %56 = vector.extract_strided_slice %46 {offsets = [2, 0], sizes = [16, 8], strides = [1, 1]} : vector<18x8xf32> to vector<16x8xf32>
    %c2_30 = arith.constant 2 : index
    %c0_31 = arith.constant 0 : index
    %c0_32 = arith.constant 0 : index
    %57 = vector.load %arg4[%c2_30, %c0_31, %c0_32] : memref<3x8x8xf32, #tpu.memory_space<vmem>>, vector<1x8x8xf32>
    %58 = vector.shape_cast %57 : vector<1x8x8xf32> to vector<8x8xf32>
    %cst_33 = arith.constant dense<0.000000e+00> : vector<16x8xf32>
    %59 = tpu.matmul %56, %58, %cst_33 {dimension_numbers = #tpu.dot_dimension_numbers<[1], [0], [0], [1], [0, 0, 1, 1], [], []>} : vector<16x8xf32>, vector<8x8xf32>, vector<16x8xf32> -> vector<16x8xf32>
    %60 = arith.addf %55, %59 : vector<16x8xf32>
    %61 = vector.broadcast %4 : vector<1x8xf32> to vector<16x8xf32>
    %62 = arith.addf %60, %61 : vector<16x8xf32>
    %63 = vector.extract_strided_slice %14 {offsets = [1, 0], sizes = [16, 8], strides = [1, 1]} : vector<18x8xf32> to vector<16x8xf32>
    %64 = arith.addf %62, %63 : vector<16x8xf32>
    %cst_34 = arith.constant 0.000000e+00 : f32
    %65 = vector.broadcast %cst_34 : f32 to vector<16x8xf32>
    %66 = arith.maximumf %64, %65 : vector<16x8xf32>
    %c0_35 = arith.constant 0 : index
    %c0_36 = arith.constant 0 : index
    %c0_37 = arith.constant 0 : index
    %67 = vector.load %arg6[%c0_35, %c0_36, %c0_37] : memref<1x16x8xf32, #tpu.memory_space<vmem>>, vector<1x16x8xf32>
    %68 = vector.shape_cast %67 : vector<1x16x8xf32> to vector<16x8xf32>
    %69 = vector.shape_cast %66 : vector<16x8xf32> to vector<1x16x8xf32>
    tpu.vector_store %arg6[%c0_35, %c0_36, %c0_37], %69 {strides = array<i32>} : memref<1x16x8xf32, #tpu.memory_space<vmem>>, vector<1x16x8xf32>,
    return
  }
  func.func @transform_0(%arg0: i32, %arg1: i32) -> (i32, i32, i32) {
    %c0_i32 = arith.constant 0 : i32
    %c0_i32_0 = arith.constant 0 : i32
    %c0_i32_1 = arith.constant 0 : i32
    return %arg0, %c0_i32, %c0_i32_0 : i32, i32, i32
  }
  func.func @transform_1(%arg0: i32, %arg1: i32) -> (i32, i32, i32) {
    %c0_i32 = arith.constant 0 : i32
    %c0_i32_0 = arith.constant 0 : i32
    %c0_i32_1 = arith.constant 0 : i32
    %c0_i32_2 = arith.constant 0 : i32
    return %c0_i32, %c0_i32_0, %c0_i32_1 : i32, i32, i32
  }
  func.func @transform_2(%arg0: i32, %arg1: i32) -> (i32, i32, i32) {
    %c0_i32 = arith.constant 0 : i32
    %c0_i32_0 = arith.constant 0 : i32
    %c0_i32_1 = arith.constant 0 : i32
    %c0_i32_2 = arith.constant 0 : i32
    return %c0_i32, %c0_i32_0, %c0_i32_1 : i32, i32, i32
  }
  func.func @transform_3(%arg0: i32, %arg1: i32) -> (i32, i32) {
    %c0_i32 = arith.constant 0 : i32
    %c0_i32_0 = arith.constant 0 : i32
    %c0_i32_1 = arith.constant 0 : i32
    return %c0_i32, %c0_i32_0 : i32, i32
  }
  func.func @transform_4(%arg0: i32, %arg1: i32) -> (i32, i32, i32) {
    %c0_i32 = arith.constant 0 : i32
    %c0_i32_0 = arith.constant 0 : i32
    return %arg0, %arg1, %c0_i32 : i32, i32, i32
  }
}

</mosaic_0001>

<bundles_post_ra>
// kernel: basic_block_forward.1
= control target key start
LH: loop header
LB: loop body
LE: loop exit
PB: predicated region body
PF: predicated region fallthrough
CT: control target
= control target key end

     0   :  { %s1106_s15 = smov 0   ;;  %s1108_s16 = smov 0   ;;  %s1212_s0 = inlined_call_operand.vmem [shape: f32[2,32,8], index: 0, kind: input, shape index: {}]   ;;  %s1213_s1 = inlined_call_operand.vmem [shape: f32[3,8,8], index: 1, kind: input, shape index: {}]   ;;  %s1214_s2 = inlined_call_operand.vmem [shape: f32[3,8,8], index: 2, kind: input, shape index: {}]   ;;  %s1215_s3 = inlined_call_operand.vmem [shape: f32[2,8], index: 3, kind: input, shape index: {}]   ;;  %s1216_s4 = inlined_call_operand.vmem [shape: f32[2,16,8], index: 4, kind: output, shape index: {}]  }
   0x1   :  { %s1110_s17 = smov 0  }
   0x2 LB: > { %s26_s18 = sadd.s32 1, %s1073_s16  ;;  %p923_p0 = scmp.ge.s32.totalorder %s1077_s17, 1  ;;  %s1077_s17 = sphi %s1110_s17, %s14_s17   ;;  %s1073_s16 = sphi %s1108_s16, %s1218_s16   ;;  %s1069_s15 = sphi %s1106_s15, %s1217_s15  }
   0x3   : > { %p28_p1 = scmp.ge.s32.totalorder %s26_s18, 2  ;;  %p176_p2 = scmp.lt.s32.totalorder %s1077_s17, 3 }
   0x5   : > { %s1220_s18 = smov (%p28_p1, %s26_s18), 0  ;;  %p177_p3 = pnand %p923_p0, %p176_p2 }
   0x6   : > { %p206_p4 = scmp.lt.s32.totalorder (!%p177_p3), %s1069_s15, 1 }
   0x7   : > { %180 = sbr.rel (%p177_p3) target bundleno = 451 (0x1c3), region = 36 }
   0xc   : > { %v937_v0 = vld [vmem:[%s1213_s1 + $0x8] sm:$0xff]  ;;  %v238_v1 = vld [vmem:[%s1213_s1] sm:$0xff]  ;;  %v1079_v2 = vmov 0.0   ;;  %vm1080_vm0 = vmmov 0   ;;  %s1222_s15 = smov (!%p206_p4, %s1069_s15), 1  ;;  %vm241_vm1 = vcmask 64512   ;;  %v514_v15 = vlaneseq }
   0xd   : > { %981 = vmatprep.subr.mxu0 %v1079_v2  ;;  %992 = vmatprep.subr.mxu1 %v1079_v2  ;;  %s958_s23 = sshll.u32 %s1222_s15, 5  ;;  %v944_v3 = vld [vmem:[%s1213_s1 + $0x10] sm:$0xff]  ;;  %v948_v13 = vld [vmem:[%s1214_s2 + $0x8] sm:$0xff]  ;;  %v551_v14 = vld [vmem:[%s1214_s2] sm:$0xff]  ;;  %vm557_vm3 = vcmask 1046528   ;;  %vm723_vm5 = vcmask 1045504  }
   0xe   : > { %982 = vmatpush3.msra.mxu0 %v937_v0  ;;  %983 = vmatprep.mubr.msk.f32.mxu0 %vm1080_vm0, %v1079_v2  ;;  %s210_s26 = scalar_lea.vmem %s1212_s0, %s958_s23  ;;  %v1172_v20 = vshrl.u32 %v514_v15, 7  ;;  %v222_v28 = vld [vmem:[%s1215_s3] sm:$0x3]  ;;  %v953_v60 = vld [vmem:[%s1214_s2 + $0x10] sm:$0xff]  ;;  %s959_s11 = sshll.u32 %s1222_s15, 4 }
   0xf   : > { %993 = vmatpush3.msra.mxu1 %v238_v1  ;;  %994 = vmatprep.mubr.msk.f32.mxu1 %vm1080_vm0, %v1079_v2  ;;  %v1141_v4 = vld [vmem:[%s210_s26 + $0x7] sm:$0xff]  ;;  %v1147_v6 = vld [vmem:[%s210_s26 + $0xf] sm:$0xff]  ;;  %v1155_v8 = vld [vmem:[%s210_s26 + $0x17] sm:$0x3]  ;;  %s219_s14 = scalar_lea.vmem %s1216_s4, %s959_s11 }
  0x10   : > { %1003 = vmatprep.subr.mxu0 %v1079_v2  ;;  %v928_v5 = vld [vmem:[%s210_s26 + $0x6] sm:$0xff]  ;;  %984 = vmatmul.mubr.msk.f32.vlgmr.msra.gmra.mxu0 %vm241_vm1, %v1141_v4  ;;  %v929_v7 = vld [vmem:[%s210_s26 + $0xe] sm:$0xff]  ;;  %v930_v9 = vld [vmem:[%s210_s26 + $0x16] sm:$0x3]  ;;  %v516_v25 = vsub.s32 0, %v1172_v20  ;;  %v530_v35 = vadd.s32 4294967295, %v1172_v20 }
  0x11   : > { %995 = vmatmul.mubr.msk.f32.vlgmr.msra.gmra.mxu1 %vm241_vm1, %v928_v5  ;;  %1004 = vmatpush3.msra.mxu0 %v944_v3  ;;  %v934_v10 = vld [vmem:[%s210_s26 + $0x8] sm:$0xff]  ;;  %v935_v11 = vld [vmem:[%s210_s26 + $0x10] sm:$0xff]  ;;  %v936_v12 = vld [vmem:[%s210_s26 + $0x18] sm:$0x3]  ;;  %v528_v40 = vadd.s32 16, %v1172_v20  ;;  %v819_v3 = vrot.slane %v1155_v8, 1 }
  0x12   : > { %986 = vmatprep.mubr.msk.f32.mxu0 %vm1080_vm0, %v1079_v2  ;;  %997 = vmatprep.mubr.msk.f32.mxu1 %vm1080_vm0, %v1079_v2  ;;  %v517_v32 = vrot.slane %v222_v28, %v516_v25  ;;  %vm533_vm2 = vcmp.ge.s32.totalorder %v530_v35, 0  ;;  %v816_v5 = vrot.slane %v1141_v4, 1 }
  0x13   : > { %1014 = vmatprep.subr.mxu1 %v948_v13  ;;  %v532_v48 = vadd.s32 4294967295, %v528_v40 }
  0x14   : > { %987 = vmatmul.mubr.msk.f32.gmra.mxu0 %vm241_vm1, %v1147_v6  ;;  %1015 = vmatpush3.msra.mxu1 %v948_v13 }
  0x15   : > { %998 = vmatmul.mubr.msk.f32.gmra.mxu1 %vm241_vm1, %v929_v7  ;;  %989 = vmatprep.mubr.msk.f32.mxu0 %vm1080_vm0, %v1079_v2  ;;  %vm538_vm4 = vcmp.lt.s32.totalorder %v532_v48, 16 }
  0x16   : > { %1000 = vmatprep.mubr.msk.f32.mxu1 %vm1080_vm0, %v1079_v2  ;;  %1019 = vmatprep.subr.mxu1 %v551_v14 }
  0x18   : > { %990 = vmatmul.mubr.msk.f32.gmra.mxu0 %vm241_vm1, %v1155_v8 }
  0x19   : > { %1001 = vmatmul.mubr.msk.f32.gmra.mxu1 %vm241_vm1, %v930_v9  ;;  %1005 = vmatprep.mubr.msk.f32.mxu0 %vm1080_vm0, %v1079_v2 }
  0x1c   : > { %1006 = vmatmul.mubr.msk.f32.vlgmr.msra.gmra.mxu0 %vm241_vm1, %v934_v10 }
  0x1d   : > { %1008 = vmatprep.mubr.msk.f32.mxu0 %vm1080_vm0, %v1079_v2 }
  0x20   : > { %1009 = vmatmul.mubr.msk.f32.gmra.mxu0 %vm241_vm1, %v935_v11 }
  0x21   : > { %1011 = vmatprep.mubr.msk.f32.mxu0 %vm1080_vm0, %v1079_v2  ;;  %v817_v2 = vrot.slane %v1147_v6, 1 }
  0x23   : > { %v820_v7 = vsel %vm557_vm3, %v817_v2, %v819_v3  ;;  %v818_v9 = vsel %vm557_vm3, %v816_v5, %v817_v2 }
  0x24   : > { %1012 = vmatmul.mubr.msk.f32.gmra.mxu0 %vm241_vm1, %v936_v12  ;;  %v812_v12 = vsub.s32 1, %v1172_v20 }
  0xd0   : > { %v317_v16 = vpop.f32.mrf.mxu0 }
  0xd1   : > { %v406_v17 = vpop.f32.mrf.mxu1 }
  0xd2   : > { %v985_v18 = vpop.f32.mrf.mxu0  ;;  %v407_v31 = vadd.f32 %v406_v17, %v317_v16  ;;  %v813_v16 = vrot.slane %v222_v28, %v812_v12 }
  0xd3   : > { %v996_v19 = vpop.f32.mrf.mxu1 }
  0xd4   : > { %v322_v21 = vpop.f32.mrf.mxu0 }
  0xd5   : > { %v411_v22 = vpop.f32.mrf.mxu1 }
  0xd6   : > { %v988_v23 = vpop.f32.mrf.mxu0  ;;  %v412_v37 = vadd.f32 %v411_v22, %v322_v21 }
  0xd7   : > { %v999_v24 = vpop.f32.mrf.mxu1 }
  0xd8   : > { %v327_v26 = vpop.f32.mrf.mxu0 }
  0xd9   : > { %v416_v27 = vpop.f32.mrf.mxu1 }
  0xda   : > { %v991_v29 = vpop.f32.mrf.mxu0  ;;  %v417_v44 = vadd.f32 %v416_v27, %v327_v26 }
  0xdb   : > { %v1002_v30 = vpop.f32.mrf.mxu1 }
  0xdc   : > { %v497_v33 = vpop.f32.mrf.mxu0 }
  0xdd   : > { %v511_v34 = vadd.f32 %v497_v33, %v407_v31 }
  0xde   : > { %v1007_v36 = vpop.f32.mrf.mxu0 }
  0xdf   : > { %v518_v38 = vadd.f32 %v517_v32, %v511_v34 }
  0xe0   : > { %v502_v39 = vpop.f32.mrf.mxu0 }
  0xe1   : > { %v521_v41 = vmax.f32 %v518_v38, 0.0  ;;  %v512_v42 = vadd.f32 %v502_v39, %v412_v37 }
  0xe2   : > { %v1010_v43 = vpop.f32.mrf.mxu0 }
  0xe3   : > { %v519_v45 = vadd.f32 %v517_v32, %v512_v42  ;;  %v548_v46 = vsel %vm533_vm2, %v521_v41, 0.0 }
  0xe4   : > { %v507_v47 = vpop.f32.mrf.mxu0  ;;  %v558_v52 = vrot.slane %v548_v46, 1  ;;  %v724_v62 = vrot.slane %v548_v46, 2 }
  0xe5   : > { %v522_v49 = vmax.f32 %v519_v45, 0.0  ;;  %v513_v50 = vadd.f32 %v507_v47, %v417_v44 }
  0xe6   : > { %v1013_v51 = vpop.f32.mrf.mxu0 }
  0xe7   : > { %v559_v53 = vrot.slane %v522_v49, 1  ;;  %v520_v54 = vadd.f32 %v517_v32, %v513_v50  ;;  %v725_v61 = vrot.slane %v522_v49, 2 }
  0xe9   : > { %v523_v55 = vmax.f32 %v520_v54, 0.0  ;;  %v560_v56 = vsel %vm557_vm3, %v558_v52, %v559_v53  ;;  %v726_v0 = vsel %vm723_vm5, %v724_v62, %v725_v61 }
  0xea   : > { %1016 = vmatprep.mubr.msk.f32.mxu1 %vm241_vm1, %v560_v56 }
  0xeb   : > { %v550_v57 = vsel %vm538_vm4, %v523_v55, 0.0 }
  0xec   : > { %v561_v58 = vrot.slane %v550_v57, 1  ;;  %v727_v63 = vrot.slane %v550_v57, 2 }
  0xee   : > { %v562_v59 = vsel %vm557_vm3, %v559_v53, %v561_v58  ;;  %v728_v1 = vsel %vm723_vm5, %v725_v61, %v727_v63 }
  0xef   : > { %1017 = vmatmul.mubr.msk.f32.vlgmr.msra.gmra.mxu1 %vm241_vm1, %v562_v59 }
  0xf0   : > { %1020 = vmatpush3.msra.mxu1 %v551_v14  ;;  %1021 = vmatprep.mubr.msk.f32.mxu1 %vm241_vm1, %v548_v46 }
  0xf1   : > { %1024 = vmatprep.subr.mxu1 %v953_v60 }
  0xf3   : > { %1022 = vmatmul.mubr.msk.f32.vlgmr.msra.gmra.mxu1 %vm241_vm1, %v522_v49 }
  0xf4   : > { %1025 = vmatpush3.msra.mxu1 %v953_v60  ;;  %1026 = vmatprep.mubr.msk.f32.mxu1 %vm241_vm1, %v726_v0 }
  0xf7   : > { %1027 = vmatmul.mubr.msk.f32.vlgmr.msra.gmra.mxu1 %vm241_vm1, %v728_v1 }
 0x1af   : > { %v1018_v10 = vpop.f32.mrf.mxu1 }
 0x1b1   : > { %v633_v11 = vpop.f32.mrf.mxu1 }
 0x1b3   : > { %v1023_v13 = vpop.f32.mrf.mxu1 }
 0x1b4   : > { %v718_v15 = vadd.f32 %v1023_v13, %v1018_v10 }
 0x1b5   : > { %v712_v14 = vpop.f32.mrf.mxu1 }
 0x1b6   : > { %v713_v18 = vadd.f32 %v712_v14, %v633_v11 }
 0x1b7   : > { %v1028_v17 = vpop.f32.mrf.mxu1 }
 0x1b8   : > { %v809_v6 = vadd.f32 %v1028_v17, %v718_v15 }
 0x1b9   : > { %v799_v19 = vpop.f32.mrf.mxu1 }
 0x1ba   : > { %v815_v8 = vadd.f32 %v813_v16, %v809_v6  ;;  %v808_v21 = vadd.f32 %v799_v19, %v713_v18 }
 0x1bc   : > { %v824_v4 = vadd.f32 %v820_v7, %v815_v8  ;;  %v814_v22 = vadd.f32 %v813_v16, %v808_v21 }
 0x1be   : > { %v826_v23 = vmax.f32 %v824_v4, 0.0  ;;  %v823_v24 = vadd.f32 %v818_v9, %v814_v22 }
 0x1c0   : > { %828 = vst.msk [vmem:[%s219_s14 + $0x8] sm:$0xff] %vm241_vm1, %v826_v23  ;;  %v825_v20 = vmax.f32 %v823_v24, 0.0 }
 0x1c2   : > { %827 = vst.msk [vmem:[%s219_s14] sm:$0xff] %vm241_vm1, %v825_v20 }
 0x1c3 PF: > { %s14_s17 = sadd.s32 1, %s1077_s17   ;;  %s1217_s15 = smov %s1073_s16 }
 0x1c4   : > { %p11_p5 = scmp.ge.s32.totalorder %s14_s17, 4   ;;  %s1218_s16 = smov %s1220_s18 }
 0x1c6   :  { %13 = sbr.rel (!%p11_p5) target bundleno = 2 (0x2), region = 73 }

</bundles_post_ra>
